<compile_context>
chip_gen: v7x
topology: tpu7x:2x2x1
jax: 0.10.0
libtpu: 0.0.40
codegen_flags: <defaults>
</compile_context>

<pallas_src>
import math

import numpy as np
import jax
import jax.numpy as jnp
from jax import lax
from jax.experimental import pallas as pl
from jax.experimental.pallas import tpu as pltpu

_EPS = 1e-5


# ---------------------------------------------------------------------------
# Kernels
# ---------------------------------------------------------------------------
def _ln_kernel_rows(x_ref, w_ref, b_ref, o_ref):
    """Plain per-row LayerNorm. x_ref: (tm, C); w_ref/b_ref: (1, C)."""
    x = x_ref[...].astype(jnp.float32)
    mu = jnp.mean(x, axis=-1, keepdims=True)
    xc = x - mu
    var = jnp.mean(xc * xc, axis=-1, keepdims=True)        # unbiased=False
    inv = lax.rsqrt(var + _EPS)                            # EUP slot
    o_ref[...] = (xc * inv * w_ref[...].astype(jnp.float32)
                  + b_ref[...].astype(jnp.float32)).astype(o_ref.dtype)


def _segdot(a, sel):
    """a @ sel with bf16 hi/lo splitting of `a`.

    `sel` is a 0/1 selection matrix (exactly representable in bf16), so the
    result is accurate to ~2**-18 relative regardless of how the MXU pass for
    wide dtypes is configured. Accumulation is f32 on the MXU.
    """
    a_hi = a.astype(jnp.bfloat16)
    a_lo = (a - a_hi.astype(jnp.float32)).astype(jnp.bfloat16)
    return (jnp.dot(a_hi, sel, preferred_element_type=jnp.float32)
            + jnp.dot(a_lo, sel, preferred_element_type=jnp.float32))


def _ln_kernel_packed(x_ref, w_ref, b_ref, seg_ref, segt_ref, o_ref):
    """Lane-dense LayerNorm: g logical rows packed per physical row.

    x_ref: (tm, W) with W = g*C; w_ref/b_ref: (1, W) = params tiled g times;
    seg_ref: (W, g) 0/1 segment-sum matrix (bf16); segt_ref: (g, W) transpose.
    """
    x = x_ref[...].astype(jnp.float32)
    seg = seg_ref[...]
    seg_t = segt_ref[...]
    c = x.shape[-1] // seg.shape[-1]
    inv_c = 1.0 / c

    mu = _segdot(x, seg) * inv_c                  # (tm, g) per-logical-row mean
    xc = x - _segdot(mu, seg_t)                   # centered, (tm, W)
    var = _segdot(xc * xc, seg) * inv_c           # (tm, g) biased variance
    inv = lax.rsqrt(var + _EPS)                   # EUP slot
    y = xc * _segdot(inv, seg_t)                  # normalized, (tm, W)
    o_ref[...] = (y * w_ref[...].astype(jnp.float32)
                  + b_ref[...].astype(jnp.float32)).astype(o_ref.dtype)


# ---------------------------------------------------------------------------
# Wrapper
# ---------------------------------------------------------------------------
def _physical_vmem_bytes():
    """Best-effort physical VMEM query; falls back to the smallest (v7x) size."""
    try:
        info = pltpu.get_tpu_info()
        for attr in ("vmem_capacity_bytes", "vmem_size_bytes", "vmem_bytes"):
            v = getattr(info, attr, None)
            if v:
                return int(v)
    except Exception:
        pass
    return 64 << 20


def _pick_row_tile(rows, row_width, dtype, vmem_budget_bytes):
    """Largest row tile whose pipelined footprint fits the VMEM budget."""
    itemsize = jnp.dtype(dtype).itemsize
    sublane = max(8, 32 // itemsize)           # 8 f32 / 16 bf16 / 32 int8-fp8 rows
    # double-buffered input + output + ~6 f32-wide temporaries per element
    per_row = row_width * (4 * itemsize + 6 * 4)
    tm = int(min(vmem_budget_bytes // max(per_row, 1), 4096))
    if tm >= rows:
        return int(rows)
    return max(sublane, (tm // sublane) * sublane)


def withbias_layernorm(x, weight, bias, *, row_tile=None):
    """LayerNorm over the last dim of x (any leading shape), with affine params."""
    orig_shape = x.shape
    C = int(orig_shape[-1])
    assert weight.shape == (C,) and bias.shape == (C,)
    R = int(np.prod(orig_shape[:-1], dtype=np.int64)) if len(orig_shape) > 1 else 1

    phys_vmem = _physical_vmem_bytes()
    vmem_limit = int(min(phys_vmem * 0.70, 100 * 2**20))   # ~45 MiB v7x, ~90 MiB v5e/v6e
    size_budget = (vmem_limit * 3) // 5                    # headroom for compiler temps

    # Lane-dense packing: view (R, C) as (R/g, g*C) with g*C a multiple of 128 so
    # DMAs / stores use full 128-lane vregs (C=48 -> g=8 -> W=384).
    g = 128 // math.gcd(C, 128)
    packed = (g > 1) and (R % g == 0) and (g * C <= 8192)

    if packed:
        rows, W = R // g, g * C
        x2 = x.reshape(rows, W)                                     # free reshape
        w2 = jnp.tile(jnp.ravel(weight), g).reshape(1, W)
        b2 = jnp.tile(jnp.ravel(bias), g).reshape(1, W)
        seg_np = (np.arange(W)[:, None] // C == np.arange(g)[None, :])
        extra_inputs = (jnp.asarray(seg_np, dtype=jnp.bfloat16),      # (W, g)
                        jnp.asarray(seg_np.T, dtype=jnp.bfloat16))    # (g, W)
        extra_specs = [pl.BlockSpec((W, g), lambda i: (0, 0)),
                       pl.BlockSpec((g, W), lambda i: (0, 0))]
        kernel = _ln_kernel_packed
    else:
        rows, W = R, C
        x2 = x.reshape(rows, W)
        w2 = jnp.reshape(weight, (1, C))
        b2 = jnp.reshape(bias, (1, C))
        extra_inputs = ()
        extra_specs = []
        kernel = _ln_kernel_rows

    if row_tile is None:
        tm = _pick_row_tile(rows, W, x.dtype, size_budget)
    else:  # test hook; caller must pass a sublane-aligned value
        tm = int(min(row_tile, rows))
    grid = (pl.cdiv(rows, tm),)   # ragged last tile: OOB writes are masked by Pallas

    itemsize = jnp.dtype(x.dtype).itemsize
    cost = pl.CostEstimate(
        flops=12 * R * C,
        transcendentals=R,
        bytes_accessed=2 * R * C * itemsize + 4 * C * itemsize,
    )

    out2 = pl.pallas_call(
        kernel,
        out_shape=jax.ShapeDtypeStruct((rows, W), x.dtype),
        grid_spec=pltpu.PrefetchScalarGridSpec(
            num_scalar_prefetch=0,
            grid=grid,
            in_specs=[pl.BlockSpec((tm, W), lambda i: (i, 0)),   # row tile of x
                      pl.BlockSpec((1, W), lambda i: (0, 0)),    # weight (resident)
                      pl.BlockSpec((1, W), lambda i: (0, 0)),    # bias   (resident)
                      *extra_specs],                             # 0/1 segment matrices
            out_specs=pl.BlockSpec((tm, W), lambda i: (i, 0)),
        ),
        compiler_params=pltpu.CompilerParams(
            # TODO(synk): on v7x switch this axis to pltpu.CORE_PARALLEL to shard row
            # tiles across both TensorCores ("parallel" is a measured no-op on v5e/v6e).
            dimension_semantics=("parallel",),
            vmem_limit_bytes=vmem_limit,
        ),
        cost_estimate=cost,
    )(x2, w2, b2, *extra_inputs)

    return out2.reshape(orig_shape)


# ---------------------------------------------------------------------------
# Reference & self-test
# ---------------------------------------------------------------------------
def _layernorm_reference_np(x, weight, bias):
    x = np.asarray(x, dtype=np.float64)
    mu = x.mean(-1, keepdims=True)
    var = x.var(-1, keepdims=True)                         # unbiased=False
    return (x - mu) / np.sqrt(var + _EPS) * np.asarray(weight, np.float64) \
        + np.asarray(bias, np.float64)


if __name__ == "__main__":
    key = jax.random.PRNGKey(0)
    k1, k2, k3, k4 = jax.random.split(key, 4)

    # Token layout the module sees in swin_bm3d: (B, H*W, C) with C=48.
    B, L, C = 2, 64, 48
    x = jax.random.normal(k1, (B, L, C), dtype=jnp.float32)
    weight = 1.0 + 0.1 * jax.random.normal(k2, (C,), dtype=jnp.float32)
    bias = 0.1 * jax.random.normal(k3, (C,), dtype=jnp.float32)

    out = jax.block_until_ready(withbias_layernorm(x, weight, bias))
    assert out.shape == (B, L, C)
    np.testing.assert_allclose(np.asarray(out),
                               _layernorm_reference_np(x, weight, bias),
                               rtol=1e-4, atol=1e-4)

    # Ragged row grid on the lane-dense path (no pad / slice copies anywhere).
    x2 = jax.random.normal(k4, (2, 100, C), dtype=jnp.float32)
    out2 = jax.block_until_ready(withbias_layernorm(x2, weight, bias, row_tile=8))
    np.testing.assert_allclose(np.asarray(out2),
                               _layernorm_reference_np(x2, weight, bias),
                               rtol=1e-4, atol=1e-4)

    # Already lane-aligned hidden size -> plain per-row kernel path.
    C3 = 128
    x3 = jax.random.normal(k1, (2, 10, C3), dtype=jnp.float32)
    w3 = jnp.ones((C3,), jnp.float32)
    b3 = jnp.zeros((C3,), jnp.float32)
    out3 = jax.block_until_ready(withbias_layernorm(x3, w3, b3))
    np.testing.assert_allclose(np.asarray(out3),
                               _layernorm_reference_np(x3, w3, b3),
                               rtol=1e-4, atol=1e-4)

    print("KERNEL_OK")
</pallas_src>

<mosaic_0001>
module attributes {stable_mosaic.version = 11 : i64} {
  func.func @_ln_kernel_packed(%arg0: i32, %arg1: memref<16x384xf32, #tpu.memory_space<vmem>>, %arg2: memref<1x384xf32, #tpu.memory_space<vmem>>, %arg3: memref<1x384xf32, #tpu.memory_space<vmem>>, %arg4: memref<384x8xbf16, #tpu.memory_space<vmem>>, %arg5: memref<8x384xbf16, #tpu.memory_space<vmem>>, %arg6: memref<16x384xf32, #tpu.memory_space<vmem>>) attributes {dimension_semantics = [#tpu.dimension_semantics<parallel>], iteration_bounds = array<i64: 1>, scalar_prefetch = 0 : i64, scratch_operands = 0 : i64, tpu.core_type = #tpu.core_type<tc>, window_params = [{transform_indices = @transform_0, window_bounds = array<i64: 16, 384>}, {pipeline_mode = #tpu.pipeline_mode<synchronous>, transform_indices = @transform_1, window_bounds = array<i64: 1, 384>}, {pipeline_mode = #tpu.pipeline_mode<synchronous>, transform_indices = @transform_2, window_bounds = array<i64: 1, 384>}, {pipeline_mode = #tpu.pipeline_mode<synchronous>, transform_indices = @transform_3, window_bounds = array<i64: 384, 8>}, {pipeline_mode = #tpu.pipeline_mode<synchronous>, transform_indices = @transform_4, window_bounds = array<i64: 8, 384>}, {transform_indices = @transform_5, window_bounds = array<i64: 16, 384>}]} {
    %c0 = arith.constant 0 : index
    %c0_0 = arith.constant 0 : index
    %0 = vector.load %arg1[%c0, %c0_0] : memref<16x384xf32, #tpu.memory_space<vmem>>, vector<16x384xf32>
    %c0_1 = arith.constant 0 : index
    %c0_2 = arith.constant 0 : index
    %1 = vector.load %arg4[%c0_1, %c0_2] : memref<384x8xbf16, #tpu.memory_space<vmem>>, vector<384x8xbf16>
    %c0_3 = arith.constant 0 : index
    %c0_4 = arith.constant 0 : index
    %2 = vector.load %arg5[%c0_3, %c0_4] : memref<8x384xbf16, #tpu.memory_space<vmem>>, vector<8x384xbf16>
    %3 = arith.truncf %0 : vector<16x384xf32> to vector<16x384xbf16>
    %4 = arith.extf %3 : vector<16x384xbf16> to vector<16x384xf32>
    %5 = arith.subf %0, %4 : vector<16x384xf32>
    %6 = arith.truncf %5 : vector<16x384xf32> to vector<16x384xbf16>
    %cst = arith.constant dense<0.000000e+00> : vector<16x8xf32>
    %7 = tpu.matmul %3, %1, %cst {dimension_numbers = #tpu.dot_dimension_numbers<[1], [0], [0], [1], [0, 0, 1, 1], [], []>} : vector<16x384xbf16>, vector<384x8xbf16>, vector<16x8xf32> -> vector<16x8xf32>
    %cst_5 = arith.constant dense<0.000000e+00> : vector<16x8xf32>
    %8 = tpu.matmul %6, %1, %cst_5 {dimension_numbers = #tpu.dot_dimension_numbers<[1], [0], [0], [1], [0, 0, 1, 1], [], []>} : vector<16x384xbf16>, vector<384x8xbf16>, vector<16x8xf32> -> vector<16x8xf32>
    %9 = arith.addf %7, %8 : vector<16x8xf32>
    %cst_6 = arith.constant 0.020833334 : f32
    %10 = vector.broadcast %cst_6 : f32 to vector<16x8xf32>
    %11 = arith.mulf %9, %10 : vector<16x8xf32>
    %12 = arith.truncf %11 : vector<16x8xf32> to vector<16x8xbf16>
    %13 = arith.extf %12 : vector<16x8xbf16> to vector<16x8xf32>
    %14 = arith.subf %11, %13 : vector<16x8xf32>
    %15 = arith.truncf %14 : vector<16x8xf32> to vector<16x8xbf16>
    %cst_7 = arith.constant dense<0.000000e+00> : vector<16x384xf32>
    %16 = tpu.matmul %12, %2, %cst_7 {dimension_numbers = #tpu.dot_dimension_numbers<[1], [0], [0], [1], [0, 0, 1, 1], [], []>} : vector<16x8xbf16>, vector<8x384xbf16>, vector<16x384xf32> -> vector<16x384xf32>
    %cst_8 = arith.constant dense<0.000000e+00> : vector<16x384xf32>
    %17 = tpu.matmul %15, %2, %cst_8 {dimension_numbers = #tpu.dot_dimension_numbers<[1], [0], [0], [1], [0, 0, 1, 1], [], []>} : vector<16x8xbf16>, vector<8x384xbf16>, vector<16x384xf32> -> vector<16x384xf32>
    %18 = arith.addf %16, %17 : vector<16x384xf32>
    %19 = arith.subf %0, %18 : vector<16x384xf32>
    %20 = arith.mulf %19, %19 : vector<16x384xf32>
    %21 = arith.truncf %20 : vector<16x384xf32> to vector<16x384xbf16>
    %22 = arith.extf %21 : vector<16x384xbf16> to vector<16x384xf32>
    %23 = arith.subf %20, %22 : vector<16x384xf32>
    %24 = arith.truncf %23 : vector<16x384xf32> to vector<16x384xbf16>
    %cst_9 = arith.constant dense<0.000000e+00> : vector<16x8xf32>
    %25 = tpu.matmul %21, %1, %cst_9 {dimension_numbers = #tpu.dot_dimension_numbers<[1], [0], [0], [1], [0, 0, 1, 1], [], []>} : vector<16x384xbf16>, vector<384x8xbf16>, vector<16x8xf32> -> vector<16x8xf32>
    %cst_10 = arith.constant dense<0.000000e+00> : vector<16x8xf32>
    %26 = tpu.matmul %24, %1, %cst_10 {dimension_numbers = #tpu.dot_dimension_numbers<[1], [0], [0], [1], [0, 0, 1, 1], [], []>} : vector<16x384xbf16>, vector<384x8xbf16>, vector<16x8xf32> -> vector<16x8xf32>
    %27 = arith.addf %25, %26 : vector<16x8xf32>
    %cst_11 = arith.constant 0.020833334 : f32
    %28 = vector.broadcast %cst_11 : f32 to vector<16x8xf32>
    %29 = arith.mulf %27, %28 : vector<16x8xf32>
    %cst_12 = arith.constant 9.99999974E-6 : f32
    %30 = vector.broadcast %cst_12 : f32 to vector<16x8xf32>
    %31 = arith.addf %29, %30 : vector<16x8xf32>
    %32 = math.rsqrt %31 : vector<16x8xf32>
    %33 = arith.truncf %32 : vector<16x8xf32> to vector<16x8xbf16>
    %34 = arith.extf %33 : vector<16x8xbf16> to vector<16x8xf32>
    %35 = arith.subf %32, %34 : vector<16x8xf32>
    %36 = arith.truncf %35 : vector<16x8xf32> to vector<16x8xbf16>
    %cst_13 = arith.constant dense<0.000000e+00> : vector<16x384xf32>
    %37 = tpu.matmul %33, %2, %cst_13 {dimension_numbers = #tpu.dot_dimension_numbers<[1], [0], [0], [1], [0, 0, 1, 1], [], []>} : vector<16x8xbf16>, vector<8x384xbf16>, vector<16x384xf32> -> vector<16x384xf32>
    %cst_14 = arith.constant dense<0.000000e+00> : vector<16x384xf32>
    %38 = tpu.matmul %36, %2, %cst_14 {dimension_numbers = #tpu.dot_dimension_numbers<[1], [0], [0], [1], [0, 0, 1, 1], [], []>} : vector<16x8xbf16>, vector<8x384xbf16>, vector<16x384xf32> -> vector<16x384xf32>
    %39 = arith.addf %37, %38 : vector<16x384xf32>
    %40 = arith.mulf %19, %39 : vector<16x384xf32>
    %c0_15 = arith.constant 0 : index
    %c0_16 = arith.constant 0 : index
    %41 = vector.load %arg2[%c0_15, %c0_16] : memref<1x384xf32, #tpu.memory_space<vmem>>, vector<1x384xf32>
    %42 = vector.broadcast %41 : vector<1x384xf32> to vector<16x384xf32>
    %43 = arith.mulf %40, %42 : vector<16x384xf32>
    %c0_17 = arith.constant 0 : index
    %c0_18 = arith.constant 0 : index
    %44 = vector.load %arg3[%c0_17, %c0_18] : memref<1x384xf32, #tpu.memory_space<vmem>>, vector<1x384xf32>
    %45 = vector.broadcast %44 : vector<1x384xf32> to vector<16x384xf32>
    %46 = arith.addf %43, %45 : vector<16x384xf32>
    %c0_19 = arith.constant 0 : index
    %c0_20 = arith.constant 0 : index
    %47 = vector.load %arg6[%c0_19, %c0_20] : memref<16x384xf32, #tpu.memory_space<vmem>>, vector<16x384xf32>
    tpu.vector_store %arg6[%c0_19, %c0_20], %46 {strides = array<i32>} : memref<16x384xf32, #tpu.memory_space<vmem>>, vector<16x384xf32>,
    return
  }
  func.func @transform_0(%arg0: i32) -> (i32, i32) {
    %c0_i32 = arith.constant 0 : i32
    %c0_i32_0 = arith.constant 0 : i32
    return %arg0, %c0_i32 : i32, i32
  }
  func.func @transform_1(%arg0: i32) -> (i32, i32) {
    %c0_i32 = arith.constant 0 : i32
    %c0_i32_0 = arith.constant 0 : i32
    %c0_i32_1 = arith.constant 0 : i32
    return %c0_i32, %c0_i32_0 : i32, i32
  }
  func.func @transform_2(%arg0: i32) -> (i32, i32) {
    %c0_i32 = arith.constant 0 : i32
    %c0_i32_0 = arith.constant 0 : i32
    %c0_i32_1 = arith.constant 0 : i32
    return %c0_i32, %c0_i32_0 : i32, i32
  }
  func.func @transform_3(%arg0: i32) -> (i32, i32) {
    %c0_i32 = arith.constant 0 : i32
    %c0_i32_0 = arith.constant 0 : i32
    %c0_i32_1 = arith.constant 0 : i32
    return %c0_i32, %c0_i32_0 : i32, i32
  }
  func.func @transform_4(%arg0: i32) -> (i32, i32) {
    %c0_i32 = arith.constant 0 : i32
    %c0_i32_0 = arith.constant 0 : i32
    %c0_i32_1 = arith.constant 0 : i32
    return %c0_i32, %c0_i32_0 : i32, i32
  }
  func.func @transform_5(%arg0: i32) -> (i32, i32) {
    %c0_i32 = arith.constant 0 : i32
    %c0_i32_0 = arith.constant 0 : i32
    return %arg0, %c0_i32 : i32, i32
  }
}

</mosaic_0001>

<bundles_post_ra>
// kernel: tpu_custom_call.1
= control target key start
LH: loop header
LB: loop body
LE: loop exit
PB: predicated region body
PF: predicated region fallthrough
CT: control target
= control target key end

     0   :  { %v1427_v1 = vmov 0.0   ;;  %vm1428_vm0 = vmmov 0   ;;  %s1874_s0 = inlined_call_operand.vmem [shape: f32[16,384], index: 0, kind: input, shape index: {}]   ;;  %s1875_s1 = inlined_call_operand.vmem [shape: f32[1,384], index: 1, kind: input, shape index: {}]   ;;  %s1876_s2 = inlined_call_operand.vmem [shape: f32[1,384], index: 2, kind: input, shape index: {}]   ;;  %s1877_s3 = inlined_call_operand.vmem [shape: bf16[384,8], index: 3, kind: input, shape index: {}]   ;;  %s1878_s4 = inlined_call_operand.vmem [shape: bf16[8,384], index: 4, kind: input, shape index: {}]   ;;  %s1879_s5 = inlined_call_operand.hbm [shape: f32[16,384], index: 5, kind: output, shape index: {}]  }
   0x1   :  { %v1466_v0 = vld [vmem:[%s1877_s3 + $0x40] sm:$0xff]   ;;  %1230 = vmatprep.subr.bf16.mxu1 %v1427_v1  ;;  %1246 = vmatprep.mubr.msk.bf16.mxu1 %vm1428_vm0, %v1427_v1  ;;  %v1486_v4 = vld [vmem:[%s1877_s3 + $0x48] sm:$0xff]   ;;  %v1504_v7 = vld [vmem:[%s1877_s3 + $0x50] sm:$0xff]  }
   0x2   :  { %v1472_v2 = vld [vmem:[%s1877_s3 + $0x80] sm:$0xff]   ;;  %1098 = vmatprep.subr.bf16.mxu0 %v1466_v0  ;;  %v1493_v5 = vld [vmem:[%s1877_s3 + $0x88] sm:$0xff]   ;;  %v1510_v8 = vld [vmem:[%s1877_s3 + $0x90] sm:$0xff]  }
   0x3   :  { %v1478_v3 = vld [vmem:[%s1877_s3] sm:$0xff]   ;;  %1231 = vmatpush3.bf16.msra.mxu1 %v1472_v2  ;;  %v1499_v6 = vld [vmem:[%s1877_s3 + $0x8] sm:$0xff]   ;;  %v1517_v9 = vld [vmem:[%s1877_s3 + $0x10] sm:$0xff]  }
   0x4   :  { %1099 = vmatpush3.bf16.msra.mxu0 %v1478_v3  ;;  %1232 = vmatprep.subr.bf16.mxu1 %v1427_v1  ;;  %v1523_v10 = vld [vmem:[%s1877_s3 + $0x58] sm:$0xff]   ;;  %v1542_v13 = vld [vmem:[%s1877_s3 + $0x60] sm:$0xff]   ;;  %v1561_v16 = vld [vmem:[%s1877_s3 + $0x68] sm:$0xff]  }
   0x5   :  { %1100 = vmatprep.subr.bf16.mxu0 %v1486_v4  ;;  %v1529_v11 = vld [vmem:[%s1877_s3 + $0x98] sm:$0xff]   ;;  %v1548_v14 = vld [vmem:[%s1877_s3 + $0xa0] sm:$0xff]   ;;  %v1566_v17 = vld [vmem:[%s1877_s3 + $0xa8] sm:$0xff]  }
   0x6   :  { %v1536_v12 = vld [vmem:[%s1877_s3 + $0x18] sm:$0xff]   ;;  %v1555_v15 = vld [vmem:[%s1877_s3 + $0x20] sm:$0xff]   ;;  %v1572_v18 = vld [vmem:[%s1877_s3 + $0x28] sm:$0xff]  }
   0x7   :  { %1233 = vmatpush3.bf16.msra.mxu1 %v1493_v5  ;;  %v1579_v19 = vld [vmem:[%s1877_s3 + $0x70] sm:$0xff]   ;;  %v1596_v22 = vld [vmem:[%s1877_s3 + $0x78] sm:$0xff]   ;;  %v1603_v23 = vld [vmem:[%s1874_s0 + $0x8] sm:$0xff] }
   0x8   :  { %1101 = vmatpush3.bf16.msra.mxu0 %v1499_v6  ;;  %1234 = vmatprep.subr.bf16.mxu1 %v1427_v1  ;;  %v1585_v20 = vld [vmem:[%s1877_s3 + $0xb0] sm:$0xff]   ;;  %v1608_v24 = vld [vmem:[%s1874_s0 + $0x20] sm:$0xff]  ;;  %v1621_v27 = vld [vmem:[%s1874_s0 + $0x18] sm:$0xff] }
   0x9   :  { %1102 = vmatprep.subr.bf16.mxu0 %v1504_v7  ;;  %v1590_v21 = vld [vmem:[%s1877_s3 + $0x30] sm:$0xff]   ;;  %v1613_v25 = vld [vmem:[%s1874_s0] sm:$0xff]  ;;  %v79_v26 = vpack.c.bf16 %v1608_v24, %v1603_v23  ;;  %v1631_v29 = vld [vmem:[%s1874_s0 + $0x28] sm:$0xff] }
   0xa   :  { %v1626_v28 = vld [vmem:[%s1874_s0 + $0x10] sm:$0xff]  ;;  %v1635_v30 = vpack.c.bf16 %v1621_v27, %v1613_v25 }
   0xb   :  { %1235 = vmatpush3.bf16.msra.mxu1 %v1510_v8  ;;  %v80_v31 = vpack.c.bf16 %v1631_v29, %v1626_v28 }
   0xc   :  { %1103 = vmatpush3.bf16.msra.mxu0 %v1517_v9  ;;  %1236 = vmatprep.subr.bf16.mxu1 %v1427_v1 }
   0xd   :  { %1104 = vmatprep.subr.bf16.mxu0 %v1523_v10 }
   0xf   :  { %1237 = vmatpush3.bf16.msra.mxu1 %v1529_v11 }
  0x10   :  { %1105 = vmatpush3.bf16.msra.mxu0 %v1536_v12  ;;  %1238 = vmatprep.subr.bf16.mxu1 %v1427_v1 }
  0x11   :  { %1106 = vmatprep.subr.bf16.mxu0 %v1542_v13 }
  0x13   :  { %1239 = vmatpush3.bf16.msra.mxu1 %v1548_v14 }
  0x14   :  { %1107 = vmatpush3.bf16.msra.mxu0 %v1555_v15  ;;  %1240 = vmatprep.subr.bf16.mxu1 %v1427_v1 }
  0x15   :  { %1108 = vmatprep.subr.bf16.mxu0 %v1561_v16 }
  0x17   :  { %1241 = vmatpush3.bf16.msra.mxu1 %v1566_v17 }
  0x18   :  { %1109 = vmatpush3.bf16.msra.mxu0 %v1572_v18  ;;  %1242 = vmatprep.subr.bf16.mxu1 %v1427_v1 }
  0x19   :  { %1110 = vmatprep.subr.bf16.mxu0 %v1579_v19 }
  0x1a   :  { %10 = vsyncpa [#allocation3], 0  ;;  %v1643_v32 = vld [vmem:[%s1877_s3 + $0xb8] sm:$0xff]   ;;  %v82_v33 = vunpack.c.l.bf16 %v79_v26  ;;  %v85_v34 = vunpack.c.h.bf16 %v79_v26  ;;  %v81_v36 = vunpack.c.l.bf16 %v1635_v30  ;;  %v84_v37 = vunpack.c.h.bf16 %v1635_v30  ;;  %v76_v49 = vld [vmem:[%s1878_s4] sm:$0xff] }
  0x1b   :  { %1243 = vmatpush3.bf16.msra.mxu1 %v1585_v20  ;;  %v1650_v35 = vld [vmem:[%s1877_s3 + $0x38] sm:$0xff]   ;;  %v83_v38 = vunpack.c.l.bf16 %v80_v31  ;;  %v86_v39 = vunpack.c.h.bf16 %v80_v31  ;;  %v1704_v50 = vcombine.high %v76_v49, %v76_v49  ;;  %v1083_v51 = vcombine.low %v76_v49, %v76_v49  ;;  %v1398_v52 = vld [vmem:[%s1878_s4 + $0x8] ss:$0 sps:$4 sm:$0xff]  }
  0x1c   :  { %1111 = vmatpush3.bf16.msra.mxu0 %v1590_v21  ;;  %1244 = vmatprep.subr.bf16.mxu1 %v1427_v1  ;;  %v88_v40 = vsub.f32 %v1603_v23, %v82_v33  ;;  %v91_v41 = vsub.f32 %v1608_v24, %v85_v34  ;;  %v87_v42 = vsub.f32 %v1613_v25, %v81_v36  ;;  %vm424_vm1 = vcmask 1043456  }
  0x1d   :  { %1112 = vmatprep.subr.bf16.mxu0 %v1596_v22  ;;  %v90_v43 = vsub.f32 %v1621_v27, %v84_v37  ;;  %v89_v44 = vsub.f32 %v1626_v28, %v83_v38  ;;  %v92_v45 = vsub.f32 %v1631_v29, %v86_v39  ;;  %v1712_v53 = vsel %vm424_vm1, %v1083_v51, 0 }
  0x1e   :  { %v94_v46 = vpack.c.bf16 %v91_v41, %v88_v40  ;;  %v1715_v54 = vsel %vm424_vm1, %v1398_v52, 0  ;;  %v1429_v55 = vmov 0   ;;  %vm420_vm2 = vcmask 64512  }
  0x1f   :  { %1245 = vmatpush3.bf16.msra.mxu1 %v1643_v32  ;;  %v93_v47 = vpack.c.bf16 %v90_v43, %v87_v42  ;;  %v95_v48 = vpack.c.bf16 %v92_v45, %v89_v44 }
  0x20   :  { %1113 = vmatpush3.bf16.msra.mxu0 %v1650_v35  ;;  %1250 = vmatprep.subr.bf16.mxu1 %v1427_v1 }
  0x21   :  { %272 = vmatprep.mubr.bf16.mxu0 %v94_v46  ;;  %1129 = vmatprep.subr.bf16.mxu0 %v1466_v0 }
  0x22   :  { %1247 = vmatmul.mubr.bf16.vlgmr.msra.gmra.mrb[0].mxu1 %v95_v48 }
  0x23   :  { %273 = vmatmul.mubr.bf16.vlgmr.msra.gmra.mrb[0].mxu0 %v93_v47  ;;  %1251 = vmatpush3.bf16.msra.mxu1 %v1472_v2 }
  0x24   :  { %1130 = vmatpush3.bf16.msra.mxu0 %v1478_v3  ;;  %1252 = vmatprep.subr.bf16.mxu1 %v1427_v1 }
  0x25   :  { %1131 = vmatprep.subr.bf16.mxu0 %v1486_v4  ;;  %1266 = vmatprep.mubr.msk.bf16.mxu1 %vm1428_vm0, %v1427_v1 }
  0x26   :  { %354 = vmatprep.mubr.bf16.mxu0 %v79_v26 }
  0x27   :  { %1253 = vmatpush3.bf16.msra.mxu1 %v1493_v5 }
  0x28   :  { %1132 = vmatpush3.bf16.msra.mxu0 %v1499_v6  ;;  %1254 = vmatprep.subr.bf16.mxu1 %v1427_v1 }
  0x29   :  { %1133 = vmatprep.subr.bf16.mxu0 %v1504_v7 }
  0x2b   :  { %1255 = vmatpush3.bf16.msra.mxu1 %v1510_v8 }
  0x2c   :  { %1134 = vmatpush3.bf16.msra.mxu0 %v1517_v9  ;;  %1256 = vmatprep.subr.bf16.mxu1 %v1427_v1 }
  0x2d   :  { %1135 = vmatprep.subr.bf16.mxu0 %v1523_v10 }
  0x2f   :  { %1257 = vmatpush3.bf16.msra.mxu1 %v1529_v11 }
  0x30   :  { %1136 = vmatpush3.bf16.msra.mxu0 %v1536_v12  ;;  %1258 = vmatprep.subr.bf16.mxu1 %v1427_v1 }
  0x31   :  { %1137 = vmatprep.subr.bf16.mxu0 %v1542_v13 }
  0x33   :  { %1259 = vmatpush3.bf16.msra.mxu1 %v1548_v14 }
  0x34   :  { %1138 = vmatpush3.bf16.msra.mxu0 %v1555_v15  ;;  %1260 = vmatprep.subr.bf16.mxu1 %v1427_v1 }
  0x35   :  { %1139 = vmatprep.subr.bf16.mxu0 %v1561_v16 }
  0x37   :  { %1261 = vmatpush3.bf16.msra.mxu1 %v1566_v17 }
  0x38   :  { %1140 = vmatpush3.bf16.msra.mxu0 %v1572_v18  ;;  %1262 = vmatprep.subr.bf16.mxu1 %v1427_v1 }
  0x39   :  { %1141 = vmatprep.subr.bf16.mxu0 %v1579_v19 }
  0x3b   :  { %1263 = vmatpush3.bf16.msra.mxu1 %v1585_v20 }
  0x3c   :  { %1142 = vmatpush3.bf16.msra.mxu0 %v1590_v21  ;;  %1264 = vmatprep.subr.bf16.mxu1 %v1427_v1 }
  0x3d   :  { %1143 = vmatprep.subr.bf16.mxu0 %v1596_v22 }
  0x3f   :  { %1265 = vmatpush3.bf16.msra.mxu1 %v1643_v32 }
  0x40   :  { %1144 = vmatpush3.bf16.msra.mxu0 %v1650_v35  ;;  %1270 = vmatprep.subr.bf16.mxu1 %v1427_v1 }
  0x41   :  { %1086 = vmatprep.subr.msk.bf16.mxu0 %vm424_vm1, %v1704_v50 }
  0x42   :  { %1267 = vmatmul.mubr.bf16.vlgmr.msra.gmra.mrb[0].mxu1 %v80_v31 }
  0x43   :  { %355 = vmatmul.mubr.bf16.vlgmr.msra.gmra.mrb[4].mxu0 %v1635_v30  ;;  %1272 = vmatprep.mubr.msk.bf16.mxu1 %vm1428_vm0, %v1427_v1 }
  0x44   :  { %435 = vmatpush1.bf16.msra.mxu0 %v1712_v53  ;;  %1271 = vmatpush3.bf16.msra.mxu1 %v1715_v54 }
  0x45   :  { %1089 = vmatprep.subr.msk.bf16.mxu0 %vm424_vm1, %v1704_v50  ;;  %1276 = vmatprep.subr.bf16.mxu1 %v1427_v1 }
  0x46   :  { %466 = vmatprep.mubr.bf16.mxu0 %v1429_v55 }
  0xf6   :  { %v1114_v56 = vpop.f32.mrb[0].mxu0 }
  0xf7   :  { %v1115_v57 = vpop.f32.mrb[1].mxu0 }
  0xf8   :  { %v1116_v58 = vadd.f32 %v1115_v57, %v1114_v56  ;;  %v1117_v59 = vpop.f32.mrb[2].mxu0 }
  0xf9   :  { %v1118_v60 = vpop.f32.mrb[3].mxu0 }
  0xfa   :  { %v1119_v61 = vadd.f32 %v1118_v60, %v1117_v59 }
 0x115   :  { %v397_v62 = vpop.f32.mrb[0].mxu1 }
 0x116   :  { %v1145_v63 = vpop.f32.mrb[4].mxu0  ;;  %v1268_v26 = vpop.f32.mrb[1].mxu1 }
 0x117   :  { %v1146_v30 = vpop.f32.mrb[5].mxu0  ;;  %v400_v31 = vpop.f32.mrb[2].mxu1 }
 0x118   :  { %v1147_v33 = vadd.f32 %v1146_v30, %v1145_v63  ;;  %v1148_v34 = vpop.f32.mrb[6].mxu0  ;;  %v1269_v36 = vpop.f32.mrb[3].mxu1 }
 0x119   :  { %v1149_v37 = vpop.f32.mrb[7].mxu0 }
 0x11a   :  { %v1334_v38 = vadd.f32 %v1147_v33, %v1116_v58  ;;  %v1150_v39 = vadd.f32 %v1149_v37, %v1148_v34 }
 0x11c   :  { %v1335_v40 = vadd.f32 %v1334_v38, %v397_v62  ;;  %v1336_v41 = vadd.f32 %v1150_v39, %v1119_v61 }
 0x11e   :  { %v1337_v42 = vadd.f32 %v1336_v41, %v400_v31  ;;  %v404_v43 = vmul.f32 0.020833334, %v1335_v40 }
 0x120   :  { %v405_v44 = vmul.f32 0.020833334, %v1337_v42 }
 0x122   :  { %v406_v45 = vpack.c.bf16 %v405_v44, %v404_v43 }
 0x124   :  { %v407_v46 = vunpack.c.l.bf16 %v406_v45  ;;  %v408_v47 = vunpack.c.h.bf16 %v406_v45 }
 0x126   :  { %v409_v48 = vsub.f32 %v404_v43, %v407_v46  ;;  %v410_v49 = vsub.f32 %v405_v44, %v408_v47 }
 0x128   :  { %v411_v51 = vpack.c.bf16 %v410_v49, %v409_v48 }
 0x12a   :  { %1087 = vmatmul.mubr.msk.bf16.vlgmr.msra.gmra.mrb[8].mxu0 %vm420_vm2, %v411_v51  ;;  %1273 = vmatmul.mubr.msk.bf16.vlgmr.msra.gmra.mrb[4].mxu1 %vm420_vm2, %v411_v51 }
 0x12b   :  { %522 = vmatpush1.bf16.msra.mxu0 %v1712_v53  ;;  %1277 = vmatpush3.bf16.msra.mxu1 %v1715_v54 }
 0x12c   :  { %553 = vmatprep.mubr.bf16.mxu0 %v1429_v55  ;;  %1278 = vmatprep.mubr.msk.bf16.mxu1 %vm1428_vm0, %v1427_v1 }
 0x12d   :  { %1282 = vmatprep.subr.bf16.mxu1 %v1427_v1  ;;  %1164 = vmatprep.subr.bf16.mxu0 %v1466_v0 }
 0x136   :  { %1090 = vmatmul.mubr.msk.bf16.vlgmr.msra.gmra.mrb[8].mxu0 %vm420_vm2, %v406_v45  ;;  %1279 = vmatmul.mubr.msk.bf16.vlgmr.msra.gmra.mrb[4].mxu1 %vm420_vm2, %v406_v45 }
 0x137   :  { %1283 = vmatpush3.bf16.msra.mxu1 %v1472_v2  ;;  %1165 = vmatpush3.bf16.msra.mxu0 %v1478_v3 }
 0x138   :  { %1284 = vmatprep.subr.bf16.mxu1 %v1427_v1  ;;  %1166 = vmatprep.subr.bf16.mxu0 %v1486_v4 }
 0x139   :  { %1298 = vmatprep.mubr.msk.bf16.mxu1 %vm1428_vm0, %v1427_v1 }
 0x13b   :  { %1285 = vmatpush3.bf16.msra.mxu1 %v1493_v5  ;;  %1167 = vmatpush3.bf16.msra.mxu0 %v1499_v6 }
 0x13c   :  { %1286 = vmatprep.subr.bf16.mxu1 %v1427_v1  ;;  %1168 = vmatprep.subr.bf16.mxu0 %v1504_v7 }
 0x13f   :  { %1287 = vmatpush3.bf16.msra.mxu1 %v1510_v8  ;;  %1169 = vmatpush3.bf16.msra.mxu0 %v1517_v9 }
 0x140   :  { %1288 = vmatprep.subr.bf16.mxu1 %v1427_v1  ;;  %1170 = vmatprep.subr.bf16.mxu0 %v1523_v10 }
 0x143   :  { %1289 = vmatpush3.bf16.msra.mxu1 %v1529_v11  ;;  %1171 = vmatpush3.bf16.msra.mxu0 %v1536_v12 }
 0x144   :  { %1290 = vmatprep.subr.bf16.mxu1 %v1427_v1  ;;  %1172 = vmatprep.subr.bf16.mxu0 %v1542_v13 }
 0x147   :  { %1291 = vmatpush3.bf16.msra.mxu1 %v1548_v14  ;;  %1173 = vmatpush3.bf16.msra.mxu0 %v1555_v15 }
 0x148   :  { %1292 = vmatprep.subr.bf16.mxu1 %v1427_v1  ;;  %1174 = vmatprep.subr.bf16.mxu0 %v1561_v16 }
 0x14b   :  { %1293 = vmatpush3.bf16.msra.mxu1 %v1566_v17  ;;  %1175 = vmatpush3.bf16.msra.mxu0 %v1572_v18 }
 0x14c   :  { %1294 = vmatprep.subr.bf16.mxu1 %v1427_v1  ;;  %1176 = vmatprep.subr.bf16.mxu0 %v1579_v19 }
 0x14f   :  { %1295 = vmatpush3.bf16.msra.mxu1 %v1585_v20  ;;  %1177 = vmatpush3.bf16.msra.mxu0 %v1590_v21 }
 0x150   :  { %1296 = vmatprep.subr.bf16.mxu1 %v1427_v1  ;;  %1178 = vmatprep.subr.bf16.mxu0 %v1596_v22 }
 0x153   :  { %1297 = vmatpush3.bf16.msra.mxu1 %v1643_v32  ;;  %1179 = vmatpush3.bf16.msra.mxu0 %v1650_v35 }
 0x154   :  { %1302 = vmatprep.subr.bf16.mxu1 %v1427_v1  ;;  %1195 = vmatprep.subr.bf16.mxu0 %v1466_v0 }
 0x209   :  { %v555_v52 = vpop.f32.mrb[8].mxu0  ;;  %v598_v56 = vpop.f32.mrb[4].mxu1 }
 0x20a   :  { %v1769_v57 = vsub.f32 %v1613_v25, %v555_v52  ;;  %v1772_v58 = vsub.f32 %v1626_v28, %v598_v56  ;;  %v557_v59 = vpop.f32.mrb[9].mxu0  ;;  %v1280_v60 = vpop.f32.mrb[5].mxu1 }
 0x20b   :  { %v1775_v61 = vsub.f32 %v1603_v23, %v557_v59  ;;  %v559_v62 = vpop.f32.mrb[10].mxu0  ;;  %v601_v63 = vpop.f32.mrb[6].mxu1 }
 0x20c   :  { %v1778_v26 = vsub.f32 %v1621_v27, %v559_v62  ;;  %v1781_v0 = vsub.f32 %v1631_v29, %v601_v63  ;;  %v561_v30 = vpop.f32.mrb[11].mxu0  ;;  %v1281_v31 = vpop.f32.mrb[7].mxu1  ;;  %v611_v28 = vmul.f32 %v1769_v57, %v1769_v57  ;;  %v613_v23 = vmul.f32 %v1772_v58, %v1772_v58 }
 0x20d   :  { %v1784_v25 = vsub.f32 %v1608_v24, %v561_v30  ;;  %v612_v29 = vmul.f32 %v1775_v61, %v1775_v61 }
 0x20e   :  { %v614_v33 = vmul.f32 %v1778_v26, %v1778_v26  ;;  %v616_v27 = vmul.f32 %v1781_v0, %v1781_v0 }
 0x20f   :  { %v615_v34 = vmul.f32 %v1784_v25, %v1784_v25 }
 0x210   :  { %v617_v24 = vpack.c.bf16 %v614_v33, %v611_v28  ;;  %v619_v36 = vpack.c.bf16 %v616_v27, %v613_v23 }
 0x211   :  { %v618_v37 = vpack.c.bf16 %v615_v34, %v612_v29 }
 0x212   :  { %v620_v38 = vunpack.c.l.bf16 %v617_v24  ;;  %v623_v39 = vunpack.c.h.bf16 %v617_v24  ;;  %v622_v40 = vunpack.c.l.bf16 %v619_v36  ;;  %v625_v41 = vunpack.c.h.bf16 %v619_v36 }
 0x213   :  { %v624_v42 = vunpack.c.h.bf16 %v618_v37  ;;  %v621_v43 = vunpack.c.l.bf16 %v618_v37 }
 0x214   :  { %v626_v44 = vsub.f32 %v611_v28, %v620_v38  ;;  %v629_v45 = vsub.f32 %v614_v33, %v623_v39  ;;  %v628_v46 = vsub.f32 %v613_v23, %v622_v40  ;;  %v631_v47 = vsub.f32 %v616_v27, %v625_v41 }
 0x215   :  { %v630_v48 = vsub.f32 %v615_v34, %v624_v42  ;;  %v627_v49 = vsub.f32 %v612_v29, %v621_v43  ;;  %v993_v33 = vlaneseq }
 0x216   :  { %v634_v51 = vpack.c.bf16 %v631_v47, %v628_v46  ;;  %v632_v56 = vpack.c.bf16 %v629_v45, %v626_v44 }
 0x217   :  { %v633_v52 = vpack.c.bf16 %v630_v48, %v627_v49  ;;  %v994_v27 = vshrl.u32 %v993_v33, 7 }
 0x218   :  { %1299 = vmatmul.mubr.bf16.vlgmr.msra.gmra.mrb[8].mxu1 %v634_v51 }
 0x219   :  { %1303 = vmatpush3.bf16.msra.mxu1 %v1472_v2  ;;  %667 = vmatprep.mubr.bf16.mxu0 %v633_v52  ;;  %v995_v29 = vsub.s32 0, %v994_v27  ;;  %v1003_v34 = vsub.s32 2, %v994_v27 }
 0x21a   :  { %668 = vmatmul.mubr.bf16.vlgmr.msra.gmra.mrb[12].mxu0 %v632_v56  ;;  %1304 = vmatprep.subr.bf16.mxu1 %v1427_v1 }
 0x21b   :  { %1196 = vmatpush3.bf16.msra.mxu0 %v1478_v3  ;;  %749 = vmatprep.mubr.bf16.mxu0 %v618_v37 }
 0x21c   :  { %1197 = vmatprep.subr.bf16.mxu0 %v1486_v4  ;;  %1318 = vmatprep.mubr.msk.bf16.mxu1 %vm1428_vm0, %v1427_v1 }
 0x21d   :  { %1305 = vmatpush3.bf16.msra.mxu1 %v1493_v5 }
 0x21e   :  { %1306 = vmatprep.subr.bf16.mxu1 %v1427_v1 }
 0x21f   :  { %1198 = vmatpush3.bf16.msra.mxu0 %v1499_v6 }
 0x220   :  { %1199 = vmatprep.subr.bf16.mxu0 %v1504_v7 }
 0x221   :  { %1307 = vmatpush3.bf16.msra.mxu1 %v1510_v8 }
 0x222   :  { %1308 = vmatprep.subr.bf16.mxu1 %v1427_v1 }
 0x223   :  { %1200 = vmatpush3.bf16.msra.mxu0 %v1517_v9 }
 0x224   :  { %1201 = vmatprep.subr.bf16.mxu0 %v1523_v10 }
 0x225   :  { %1309 = vmatpush3.bf16.msra.mxu1 %v1529_v11 }
 0x226   :  { %1310 = vmatprep.subr.bf16.mxu1 %v1427_v1 }
 0x227   :  { %1202 = vmatpush3.bf16.msra.mxu0 %v1536_v12 }
 0x228   :  { %1203 = vmatprep.subr.bf16.mxu0 %v1542_v13 }
 0x229   :  { %1311 = vmatpush3.bf16.msra.mxu1 %v1548_v14 }
 0x22a   :  { %1312 = vmatprep.subr.bf16.mxu1 %v1427_v1 }
 0x22b   :  { %1204 = vmatpush3.bf16.msra.mxu0 %v1555_v15 }
 0x22c   :  { %1205 = vmatprep.subr.bf16.mxu0 %v1561_v16 }
 0x22d   :  { %1313 = vmatpush3.bf16.msra.mxu1 %v1566_v17 }
 0x22e   :  { %1314 = vmatprep.subr.bf16.mxu1 %v1427_v1 }
 0x22f   :  { %1206 = vmatpush3.bf16.msra.mxu0 %v1572_v18 }
 0x230   :  { %1207 = vmatprep.subr.bf16.mxu0 %v1579_v19 }
 0x231   :  { %1315 = vmatpush3.bf16.msra.mxu1 %v1585_v20 }
 0x232   :  { %1316 = vmatprep.subr.bf16.mxu1 %v1427_v1 }
 0x233   :  { %1208 = vmatpush3.bf16.msra.mxu0 %v1590_v21 }
 0x234   :  { %1209 = vmatprep.subr.bf16.mxu0 %v1596_v22 }
 0x235   :  { %1317 = vmatpush3.bf16.msra.mxu1 %v1643_v32 }
 0x236   :  { %1322 = vmatprep.subr.bf16.mxu1 %v1427_v1 }
 0x237   :  { %1210 = vmatpush3.bf16.msra.mxu0 %v1650_v35 }
 0x238   :  { %1319 = vmatmul.mubr.bf16.vlgmr.msra.gmra.mrb[8].mxu1 %v619_v36  ;;  %1092 = vmatprep.subr.msk.bf16.mxu0 %vm424_vm1, %v1704_v50 }
 0x239   :  { %1323 = vmatpush3.bf16.msra.mxu1 %v1715_v54  ;;  %1324 = vmatprep.mubr.msk.bf16.mxu1 %vm1428_vm0, %v1427_v1 }
 0x23a   :  { %750 = vmatmul.mubr.bf16.vlgmr.msra.gmra.mrb[16].mxu0 %v617_v24  ;;  %1328 = vmatprep.subr.bf16.mxu1 %v1427_v1  ;;  %v991_v24 = vld [vmem:[%s1875_s1] sm:$0x7]  ;;  %s1430_s1 = smov [#allocation2]  }
 0x23b   :  { %815 = vmatpush1.bf16.msra.mxu0 %v1712_v53  ;;  %846 = vmatprep.mubr.bf16.mxu0 %v1429_v55  ;;  %v1004_v36 = vrot.slane %v991_v24, %v1003_v34 }
 0x23c   :  { %1095 = vmatprep.subr.msk.bf16.mxu0 %vm424_vm1, %v1704_v50 }
 0x2ed   :  { %v1180_v2 = vpop.f32.mrb[12].mxu0 }
 0x2ee   :  { %v1181_v3 = vpop.f32.mrb[13].mxu0 }
 0x2ef   :  { %v1182_v4 = vadd.f32 %v1181_v3, %v1180_v2  ;;  %v1183_v5 = vpop.f32.mrb[14].mxu0 }
 0x2f0   :  { %v1184_v6 = vpop.f32.mrb[15].mxu0 }
 0x2f1   :  { %v1185_v7 = vadd.f32 %v1184_v6, %v1183_v5 }
 0x30b   :  { %v792_v8 = vpop.f32.mrb[8].mxu1 }
 0x30c   :  { %v1320_v9 = vpop.f32.mrb[9].mxu1 }
 0x30d   :  { %v1211_v10 = vpop.f32.mrb[16].mxu0  ;;  %v795_v11 = vpop.f32.mrb[10].mxu1 }
 0x30e   :  { %v1212_v12 = vpop.f32.mrb[17].mxu0  ;;  %v1321_v13 = vpop.f32.mrb[11].mxu1 }
 0x30f   :  { %v1213_v14 = vadd.f32 %v1212_v12, %v1211_v10  ;;  %v1214_v15 = vpop.f32.mrb[18].mxu0 }
 0x310   :  { %v1215_v16 = vpop.f32.mrb[19].mxu0 }
 0x311   :  { %v1338_v17 = vadd.f32 %v1213_v14, %v1182_v4  ;;  %v1216_v18 = vadd.f32 %v1215_v16, %v1214_v15 }
 0x313   :  { %v1339_v19 = vadd.f32 %v1338_v17, %v792_v8  ;;  %v1340_v20 = vadd.f32 %v1216_v18, %v1185_v7 }
 0x315   :  { %v799_v21 = vmul.f32 0.020833334, %v1339_v19  ;;  %v1341_v22 = vadd.f32 %v1340_v20, %v795_v11 }
 0x317   :  { %v801_v32 = vadd.f32 1e-05, %v799_v21  ;;  %v800_v35 = vmul.f32 0.020833334, %v1341_v22 }
 0x319   :  { %v802_v50 = vadd.f32 1e-05, %v800_v35  ;;  %1399 = vrsqrt.f32 %v801_v32 }
 0x31b   :  { %1401 = vrsqrt.f32 %v802_v50 }
 0x323   :  { %v1400_v59 = vpop.eup %1399 }
 0x325   :  { %v1402_v60 = vpop.eup %1401 }
 0x326   :  { %v805_v62 = vpack.c.bf16 %v1402_v60, %v1400_v59 }
 0x328   :  { %v806_v63 = vunpack.c.l.bf16 %v805_v62  ;;  %v807_v30 = vunpack.c.h.bf16 %v805_v62 }
 0x32a   :  { %v808_v31 = vsub.f32 %v1400_v59, %v806_v63  ;;  %v809_v28 = vsub.f32 %v1402_v60, %v807_v30 }
 0x32c   :  { %v810_v23 = vpack.c.bf16 %v809_v28, %v808_v31 }
 0x32e   :  { %1093 = vmatmul.mubr.msk.bf16.vlgmr.msra.gmra.mrb[20].mxu0 %vm420_vm2, %v810_v23  ;;  %1325 = vmatmul.mubr.msk.bf16.vlgmr.msra.gmra.mrb[12].mxu1 %vm420_vm2, %v810_v23 }
 0x32f   :  { %902 = vmatpush1.bf16.msra.mxu0 %v1712_v53  ;;  %1329 = vmatpush3.bf16.msra.mxu1 %v1715_v54  ;;  %v999_v53 = vsub.s32 1, %v994_v27  ;;  %v1014_v54 = vld [vmem:[%s1876_s2] sm:$0x7]  ;;  %s1048_s2 = sshll.u32 %s1430_s1, 4  ;;  %s1049_s2 = int_to_ptr.vmem [resolvable:$true] %s1048_s2 }
 0x330   :  { %933 = vmatprep.mubr.bf16.mxu0 %v1429_v55  ;;  %1330 = vmatprep.mubr.msk.bf16.mxu1 %vm1428_vm0, %v1427_v1  ;;  %v996_v55 = vrot.slane %v991_v24, %v995_v29  ;;  %v1019_v40 = vrot.slane %v1014_v54, %v995_v29  ;;  %v1027_v42 = vrot.slane %v1014_v54, %v1003_v34  ;;  %s1403_s8 = scalar_lea.vmem %s1049_s2, 768  ;;  %p1408_p1 = scmp.lt.s32.totalorder %s1049_s2, %s1049_s2 }
 0x331   :  { %v1000_v38 = vrot.slane %v991_v24, %v999_v53  ;;  %v1023_v46 = vrot.slane %v1014_v54, %v999_v53  ;;  %p1404_p0 = scmp.ne.s32.totalorder %s1049_s2, %s1403_s8  ;;  %p1409_p2 = scmp.lt.s32.totalorder %s1403_s8, %s1403_s8 }
 0x333   :  { %p1410_p3 = por %p1409_p2, %p1408_p1 }
 0x335   :  { %p1411_p4 = pnand %p1410_p3, %p1404_p0 }
 0x33a   :  { %1096 = vmatmul.mubr.msk.bf16.vlgmr.msra.gmra.mrb[20].mxu0 %vm420_vm2, %v805_v62  ;;  %1331 = vmatmul.mubr.msk.bf16.vlgmr.msra.gmra.mrb[12].mxu1 %vm420_vm2, %v805_v62 }
 0x40d   :  { %v935_v1 = vpop.f32.mrb[20].mxu0  ;;  %v978_v37 = vpop.f32.mrb[12].mxu1 }
 0x40e   :  { %v985_v39 = vmul.f32 %v935_v1, %v1769_v57  ;;  %v987_v41 = vmul.f32 %v978_v37, %v1772_v58  ;;  %v937_v43 = vpop.f32.mrb[21].mxu0  ;;  %v1332_v44 = vpop.f32.mrb[13].mxu1 }
 0x40f   :  { %v986_v45 = vmul.f32 %v937_v43, %v1775_v61  ;;  %v939_v47 = vpop.f32.mrb[22].mxu0  ;;  %v981_v48 = vpop.f32.mrb[14].mxu1 }
 0x410   :  { %v1008_v49 = vmul.f32 %v996_v55, %v985_v39  ;;  %v1010_v51 = vmul.f32 %v1004_v36, %v987_v41  ;;  %v988_v52 = vmul.f32 %v939_v47, %v1778_v26  ;;  %v990_v56 = vmul.f32 %v981_v48, %v1781_v0  ;;  %v941_v2 = vpop.f32.mrb[23].mxu0  ;;  %v1333_v3 = vpop.f32.mrb[15].mxu1 }
 0x411   :  { %v1009_v57 = vmul.f32 %v1000_v38, %v986_v45  ;;  %v989_v4 = vmul.f32 %v941_v2, %v1784_v25 }
 0x412   :  { %v1031_v58 = vadd.f32 %v1019_v40, %v1008_v49  ;;  %v1033_v5 = vadd.f32 %v1027_v42, %v1010_v51  ;;  %v1011_v6 = vmul.f32 %v996_v55, %v988_v52  ;;  %v1013_v61 = vmul.f32 %v1004_v36, %v990_v56 }
 0x413   :  { %v1032_v7 = vadd.f32 %v1023_v46, %v1009_v57  ;;  %v1012_v8 = vmul.f32 %v1000_v38, %v989_v4 }
 0x414   :  { %1037 = vst [vmem:[#allocation2] sm:$0xff] %v1031_v58  ;;  %1039 = vst [vmem:[#allocation2 + $0x10] sm:$0xff] %v1033_v5  ;;  %v1034_v9 = vadd.f32 %v1019_v40, %v1011_v6  ;;  %v1036_v10 = vadd.f32 %v1027_v42, %v1013_v61 }
 0x415   :  { %1038 = vst [vmem:[#allocation2 + $0x8] sm:$0xff] %v1032_v7  ;;  %v1035_v26 = vadd.f32 %v1023_v46, %v1012_v8 }
 0x416   :  { %1040 = vst [vmem:[#allocation2 + $0x18] sm:$0xff] %v1034_v9  ;;  %1042 = vst [vmem:[#allocation2 + $0x28] sm:$0xff] %v1036_v10 }
 0x417   :  { %1041 = vst [vmem:[#allocation2 + $0x20] sm:$0xff] %v1035_v26 }
 0x418   :  { %1414 = shalt.err (!%p1411_p4)
}
 0x419   :  { %s1415_s11 = scalar_lea.hbm %s1879_s5, 768 }
 0x41a   :  { %p1416_p5 = scmp.ne.s32.totalorder %s1879_s5, %s1415_s11  ;;  %p1419_p6 = scmp.lt.u32.totalorder %s1415_s11, %s1879_s5 }
 0x41c   :  { %p1421_p7 = pnand %p1419_p6, %p1416_p5 }
 0x41e   :  { %1424 = shalt.err (!%p1421_p7)
}
 0x41f   :  { %s1431_s16 = smov 384   ;;  %s1432_s17 = smov 24  }
 0x420   :  { %1054 = dma.vmem_to_hbm [thread:$0]  %s1049_s2, 768, %s1879_s5, [#allocation3], %s1431_s16, %s1431_s16, %s1432_s17  }
 0x421   :  { %1425 = dma.done.wait [#allocation3], 768  }
 0x422   :  { %1426 = vsyncadd [#allocation3], 4294966528 }
 0x423   :  { %1058 = vsyncpa [#allocation3], 1 }

</bundles_post_ra>
